<compile_context>
chip_gen: v7x
topology: tpu7x:2x2x1
jax: 0.10.0
libtpu: 0.0.40
codegen_flags: <defaults>
</compile_context>

<pallas_src>
import functools

import jax
import jax.numpy as jnp
from jax.experimental import pallas as pl
from jax.experimental.pallas import tpu as pltpu

_MIB = 1024 * 1024


# --------------------------------------------------------------------------- #
# Hardware-derived VMEM budget                                                 #
# --------------------------------------------------------------------------- #
def _vmem_capacity_bytes():
    try:
        info = pltpu.get_tpu_info()
        cap = getattr(info, "vmem_capacity_bytes", None)
        if cap:
            return int(cap)
    except Exception:
        pass
    return 64 * _MIB  # conservative: v7x per-TensorCore VMEM


def _vmem_budget_bytes():
    cap = _vmem_capacity_bytes()
    if cap >= 128 * _MIB:        # v5e / v6e
        return 96 * _MIB
    if cap >= 64 * _MIB:         # v7x (leave headroom for Mosaic scratch/sems)
        return 40 * _MIB
    return max(cap // 2, 8 * _MIB)


# --------------------------------------------------------------------------- #
# Kernels                                                                      #
# --------------------------------------------------------------------------- #
def _single_block_kernel(x_ref, w_ref, o_ref):
    # Whole problem in one step: (B, K) @ (K, N) -> (B, N), f32 accumulate.
    o_ref[...] = jnp.dot(
        x_ref[...], w_ref[...], preferred_element_type=jnp.float32
    ).astype(o_ref.dtype)


def _tiled_kernel_resident_x(x_ref, w_ref, o_ref, acc_ref, *, tk):
    # Grid = (N tiles ["parallel"], K tiles ["arbitrary", reduction last]).
    # x is fully resident in VMEM; only the weight streams tile-by-tile.
    k = pl.program_id(1)

    @pl.when(k == 0)
    def _():
        acc_ref[...] = jnp.zeros_like(acc_ref)

    k_off = pl.multiple_of(k * tk, tk)
    acc_ref[...] += jnp.dot(
        x_ref[:, pl.ds(k_off, tk)], w_ref[...],
        preferred_element_type=jnp.float32,
    )

    @pl.when(k == pl.num_programs(1) - 1)
    def _():
        o_ref[...] = acc_ref[...].astype(o_ref.dtype)


def _tiled_kernel_streamed_x(x_ref, w_ref, o_ref, acc_ref):
    # Same grid; x tile is re-fetched per K step (used when B*K is large).
    k = pl.program_id(1)

    @pl.when(k == 0)
    def _():
        acc_ref[...] = jnp.zeros_like(acc_ref)

    acc_ref[...] += jnp.dot(
        x_ref[...], w_ref[...], preferred_element_type=jnp.float32
    )

    @pl.when(k == pl.num_programs(1) - 1)
    def _():
        o_ref[...] = acc_ref[...].astype(o_ref.dtype)


# --------------------------------------------------------------------------- #
# Weight preparation (one-time, outside the hot path)                          #
# --------------------------------------------------------------------------- #
def prepare_weight(w, H, W, C, dtype=jnp.bfloat16):
    """Permute the PyTorch-layout weight rows (ordered (C,H,W)) into NHWC row
    order (H,W,C) so the activation needs no per-call transpose, and cast to a
    compact compute dtype (bf16).  Folded into the parameter once per model."""
    K, N = w.shape
    assert K == C * H * W, "w.shape[0] must equal C*H*W"
    w_nhwc = jnp.transpose(w.reshape(C, H, W, N), (1, 2, 0, 3)).reshape(K, N)
    return w_nhwc.astype(dtype)


def _pick_tile(dim, candidates, min_tiles=1):
    for t in sorted(candidates, reverse=True):
        if t <= dim and pl.cdiv(dim, t) >= min_tiles:
            return t
    return min(candidates)


# --------------------------------------------------------------------------- #
# Forward                                                                      #
# --------------------------------------------------------------------------- #
def linear_img_encoder_fwd(imgs, w_prepared, out_dtype=jnp.float32):
    """imgs: (B, H, W, C); w_prepared: (H*W*C, N) in NHWC row order (bf16)."""
    B, H, W, C = imgs.shape
    K, N = w_prepared.shape
    assert K == H * W * C, "w_prepared.shape[0] must equal H*W*C"

    # Free reshape (weight rows already permuted), cast to the compute dtype.
    x = imgs.reshape(B, K).astype(w_prepared.dtype)

    x_itemsize = x.dtype.itemsize
    w_itemsize = w_prepared.dtype.itemsize
    out_itemsize = jnp.dtype(out_dtype).itemsize

    ce = pl.CostEstimate(
        flops=2 * B * K * N,
        transcendentals=0,
        bytes_accessed=B * K * x_itemsize + K * N * w_itemsize + B * N * out_itemsize,
    )

    vmem_limit = _vmem_budget_bytes()

    # --- Single-step path (grid=(), no pipelining -> operands counted once) --
    single_step_bytes = (
        B * K * x_itemsize + K * N * w_itemsize + B * N * out_itemsize + B * N * 4
    )
    if single_step_bytes <= (3 * vmem_limit) // 4:
        return pl.pallas_call(
            _single_block_kernel,
            out_shape=jax.ShapeDtypeStruct((B, N), out_dtype),
            compiler_params=pltpu.CompilerParams(vmem_limit_bytes=vmem_limit),
            cost_estimate=ce,
        )(x, w_prepared)

    # --- Large-shape fallback: tile N (parallel) and reduce over K (last) ----
    if _vmem_capacity_bytes() >= 128 * _MIB:      # v5e / v6e: bigger tiles
        tn_cands = (1024, 512, 256, 128)
        tk_cands = (4096, 2048, 1024, 512, 256, 128)
    else:                                         # v7x: smaller VMEM
        tn_cands = (512, 256, 128)
        tk_cands = (2048, 1024, 512, 256, 128)

    # Prefer >=2 N tiles so v7x's two TensorCores both get parallel work.
    tn = _pick_tile(N, tn_cands, min_tiles=2 if N > 128 else 1)
    tk = _pick_tile(K, tk_cands)

    # Zero-pad K / N up to tile multiples (padded K rows contribute zero to the
    # dot; padded N columns are sliced off the output).
    Kp = pl.cdiv(K, tk) * tk
    Np = pl.cdiv(N, tn) * tn
    x_p = jnp.pad(x, ((0, 0), (0, Kp - K))) if Kp != K else x
    w_p = (
        jnp.pad(w_prepared, ((0, Kp - K), (0, Np - N)))
        if (Kp != K or Np != N)
        else w_prepared
    )

    grid = (Np // tn, Kp // tk)

    x_bytes = B * Kp * x_itemsize
    x_resident = x_bytes <= min(8 * _MIB, vmem_limit // 4)

    if x_resident:
        kernel = functools.partial(_tiled_kernel_resident_x, tk=tk)
        in_specs = [
            pl.BlockSpec((B, Kp), lambda i, k: (0, 0)),   # x fully resident
            pl.BlockSpec((tk, tn), lambda i, k: (k, i)),  # weight tile stream
        ]
    else:
        # TODO(synk): add a B grid axis (tile the batch) for very large B so
        # the x tile stays bounded and the MXU rows fill up.
        kernel = _tiled_kernel_streamed_x
        in_specs = [
            pl.BlockSpec((B, tk), lambda i, k: (0, k)),
            pl.BlockSpec((tk, tn), lambda i, k: (k, i)),
        ]

    out_p = pl.pallas_call(
        kernel,
        out_shape=jax.ShapeDtypeStruct((B, Np), out_dtype),
        grid_spec=pltpu.PrefetchScalarGridSpec(
            num_scalar_prefetch=0,
            grid=grid,
            in_specs=in_specs,
            out_specs=pl.BlockSpec((B, tn), lambda i, k: (0, i)),
            scratch_shapes=[pltpu.VMEM((B, tn), jnp.float32)],
        ),
        compiler_params=pltpu.CompilerParams(
            dimension_semantics=("parallel", "arbitrary"),
            vmem_limit_bytes=vmem_limit,
        ),
        cost_estimate=ce,
    )(x_p, w_p)

    return out_p[:, :N] if Np != N else out_p


# --------------------------------------------------------------------------- #
# Self-test                                                                    #
# --------------------------------------------------------------------------- #
if __name__ == "__main__":
    # Small shapes consistent with the module:
    #   imgs: (B=2, H=16, W=16, C=4)  => input_size = C*H*W = 1024
    #   output_size = 128
    B, H, W, C = 2, 16, 16, 4
    input_size = C * H * W
    output_size = 128

    key = jax.random.PRNGKey(0)
    k_img, k_w = jax.random.split(key)

    imgs = jax.random.normal(k_img, (B, H, W, C), dtype=jnp.float32)
    # Deterministic parameter init (the torch module's __init__ uses zeros,
    # which is trivial; use a deterministic random init of the same shape).
    w = jax.random.normal(k_w, (input_size, output_size), dtype=jnp.float32) * 0.02

    model_input = {"imgs": imgs}

    # One-time weight preparation (row permutation + bf16 cast, off hot path).
    w_prepared = prepare_weight(w, H, W, C)

    out = linear_img_encoder_fwd(model_input["imgs"], w_prepared)
    out = jax.block_until_ready(out)

    # Reference 1: same math/precision as the kernel (bf16 inputs, f32 acc).
    ref_match = jnp.dot(
        imgs.reshape(B, -1).astype(jnp.bfloat16),
        w_prepared,
        preferred_element_type=jnp.float32,
    )
    # Reference 2: exact PyTorch semantics (f32, original (C,H,W) row order).
    x_ref = jnp.transpose(imgs, (0, 3, 1, 2)).reshape(B, -1)
    ref_f32 = x_ref @ w

    assert out.shape == (B, output_size), out.shape
    assert jnp.allclose(out, ref_match, atol=1e-3, rtol=1e-3), "kernel math mismatch"
    assert jnp.allclose(out, ref_f32, atol=5e-2, rtol=5e-2), "semantics mismatch vs f32 ref"

    print("KERNEL_OK")
</pallas_src>

<mosaic_0001>
module attributes {stable_mosaic.version = 11 : i64} {
  func.func @_single_block_kernel(%arg0: memref<2x1024xbf16, #tpu.memory_space<vmem>>, %arg1: memref<1024x128xbf16, #tpu.memory_space<vmem>>, %arg2: memref<2x128xf32, #tpu.memory_space<vmem>>) attributes {dimension_semantics = [], scalar_prefetch = 0 : i64, scratch_operands = 0 : i64, tpu.core_type = #tpu.core_type<tc>} {
    %c0 = arith.constant 0 : index
    %c0_0 = arith.constant 0 : index
    %0 = vector.load %arg0[%c0, %c0_0] : memref<2x1024xbf16, #tpu.memory_space<vmem>>, vector<2x1024xbf16>
    %c0_1 = arith.constant 0 : index
    %c0_2 = arith.constant 0 : index
    %1 = vector.load %arg1[%c0_1, %c0_2] : memref<1024x128xbf16, #tpu.memory_space<vmem>>, vector<1024x128xbf16>
    %cst = arith.constant dense<0.000000e+00> : vector<2x128xf32>
    %2 = tpu.matmul %0, %1, %cst {dimension_numbers = #tpu.dot_dimension_numbers<[1], [0], [0], [1], [0, 0, 1, 1], [], []>} : vector<2x1024xbf16>, vector<1024x128xbf16>, vector<2x128xf32> -> vector<2x128xf32>
    %c0_3 = arith.constant 0 : index
    %c0_4 = arith.constant 0 : index
    %3 = vector.load %arg2[%c0_3, %c0_4] : memref<2x128xf32, #tpu.memory_space<vmem>>, vector<2x128xf32>
    tpu.vector_store %arg2[%c0_3, %c0_4], %2 {strides = array<i32>} : memref<2x128xf32, #tpu.memory_space<vmem>>, vector<2x128xf32>,
    return
  }
}

</mosaic_0001>

<bundles_post_ra>
// kernel: tpu_custom_call.1
= control target key start
LH: loop header
LB: loop body
LE: loop exit
PB: predicated region body
PF: predicated region fallthrough
CT: control target
= control target key end

     0   :  { %7 = vsyncpa [#allocation3], 0  ;;  %s1159_s0 = inlined_call_operand.hbm [shape: bf16[2,1024], index: 0, kind: input, shape index: {}]   ;;  %s1160_s1 = inlined_call_operand.hbm [shape: bf16[1024,128], index: 1, kind: input, shape index: {}]   ;;  %s1161_s2 = inlined_call_operand.hbm [shape: f32[2,128], index: 2, kind: output, shape index: {}]  }
   0x1   :  { %8 = vsyncpa [#allocation6], 0 }
   0x2   :  { %9 = vsyncpa [#allocation4], 0  ;;  %s1082_s9 = smov [#allocation2]   ;;  %s1083_s11 = smov [#allocation5]  }
   0x3   :  { %s16_s10 = sshll.u32 %s1082_s9, 4  ;;  %s25_s12 = sshll.u32 %s1083_s11, 4  ;;  %s17_s10 = int_to_ptr.vmem [resolvable:$true] %s16_s10  ;;  %s1103_s12 = int_to_ptr.vmem [resolvable:$true] %s25_s12 }
   0x4   :  { %s1010_s15 = scalar_lea.hbm %s1159_s0, 128 }
   0x5   :  { %p1011_p0 = scmp.ne.s32.totalorder %s1159_s0, %s1010_s15  ;;  %p1014_p1 = scmp.lt.u32.totalorder %s1010_s15, %s1159_s0 }
   0x7   :  { %p1016_p2 = pnand %p1014_p1, %p1011_p0 }
   0x9   :  { %1019 = shalt.err (!%p1016_p2)
}
   0xa   :  { %s1020_s20 = scalar_lea.vmem %s17_s10, 128  ;;  %p1025_p4 = scmp.lt.s32.totalorder %s17_s10, %s17_s10 }
   0xb   :  { %p1021_p3 = scmp.ne.s32.totalorder %s17_s10, %s1020_s20  ;;  %p1026_p5 = scmp.lt.s32.totalorder %s1020_s20, %s1020_s20 }
   0xd   :  { %p1027_p6 = por %p1026_p5, %p1025_p4 }
   0xf   :  { %p1028_p7 = pnand %p1027_p6, %p1021_p3 }
  0x11   :  { %1031 = shalt.err (!%p1028_p7)
}
  0x12   :  { %19 = dma.hbm_to_vmem [thread:$0]  %s1159_s0, 128, %s17_s10, [#allocation3]  }
  0x13   :  { %s1032_s25 = scalar_lea.hbm %s1160_s1, 8192 }
  0x14   :  { %p1033_p8 = scmp.ne.s32.totalorder %s1160_s1, %s1032_s25  ;;  %p1036_p9 = scmp.lt.u32.totalorder %s1032_s25, %s1160_s1 }
  0x16   :  { %p1038_p10 = pnand %p1036_p9, %p1033_p8 }
  0x18   :  { %1041 = shalt.err (!%p1038_p10)
}
  0x19   :  { %s1042_s30 = scalar_lea.vmem %s1103_s12, 8192  ;;  %p1047_p12 = scmp.lt.s32.totalorder %s1103_s12, %s1103_s12 }
  0x1a   :  { %p1043_p11 = scmp.ne.s32.totalorder %s1103_s12, %s1042_s30  ;;  %p1048_p13 = scmp.lt.s32.totalorder %s1042_s30, %s1042_s30 }
  0x1c   :  { %p1049_p0 = por %p1048_p13, %p1047_p12 }
  0x1e   :  { %p1050_p1 = pnand %p1049_p0, %p1043_p11 }
  0x20   :  { %1053 = shalt.err (!%p1050_p1)
}
  0x21   :  { %s1084_s0 = smov 64   ;;  %s1085_s3 = smov 4  }
  0x22   :  { %31 = dma.hbm_to_vmem [thread:$0]  %s1160_s1, 8192, %s1103_s12, [#allocation6], %s1084_s0, %s1084_s0, %s1085_s3  }
  0x23   :  { %1076 = dma.done.wait [#allocation3], 128  }
  0x24   :  { %1077 = vsyncadd [#allocation3], 4294967168 }
  0x25   :  { %1078 = dma.done.wait [#allocation6], 8192  }
  0x26   :  { %1079 = vsyncadd [#allocation6], 4294959104  ;;  %v945_v0 = vld [vmem:[#allocation5 + $0x40] sm:$0xff]   ;;  %v949_v4 = vld [vmem:[#allocation5 + $0x48] sm:$0xff]   ;;  %v1086_v22 = vmov 1966171168   ;;  %v173_v24 = vlaneseq }
  0x27   :  { %v946_v1 = vld [vmem:[#allocation5 + $0xc0] sm:$0xff]   ;;  %851 = vmatprep.subr.bf16.mxu0 %v945_v0  ;;  %v950_v5 = vld [vmem:[#allocation5 + $0xc8] sm:$0xff]   ;;  %v953_v8 = vld [vmem:[#allocation5 + $0x50] sm:$0xff]   ;;  %v171_v23 = vunpack.c.l.s4 %v1086_v22  ;;  %s1087_s1 = smov [#allocation7]  }
  0x28   :  { %v947_v2 = vld [vmem:[#allocation5] sm:$0xff]   ;;  %873 = vmatprep.subr.bf16.mxu1 %v946_v1  ;;  %v951_v6 = vld [vmem:[#allocation5 + $0x8] sm:$0xff]   ;;  %v954_v9 = vld [vmem:[#allocation5 + $0xd0] sm:$0xff]   ;;  %v174_v30 = vshrl.u32 %v173_v24, 7  ;;  %s777_s6 = sshll.u32 %s1087_s1, 4  ;;  %s778_s6 = int_to_ptr.vmem [resolvable:$true] %s777_s6 }
  0x29   :  { %v948_v3 = vld [vmem:[#allocation5 + $0x80] sm:$0xff]   ;;  %852 = vmatpush3.bf16.msra.mxu0 %v947_v2  ;;  %v952_v7 = vld [vmem:[#allocation5 + $0x88] sm:$0xff]   ;;  %v955_v10 = vld [vmem:[#allocation5 + $0x10] sm:$0xff]   ;;  %v172_v29 = vunpack.c.0.s8 %v171_v23  ;;  %s1054_s7 = scalar_lea.vmem %s778_s6, 32  ;;  %p1059_p3 = scmp.lt.s32.totalorder %s778_s6, %s778_s6 }
  0x2a   :  { %874 = vmatpush3.bf16.msra.mxu1 %v948_v3  ;;  %853 = vmatprep.subr.bf16.mxu0 %v949_v4  ;;  %v956_v11 = vld [vmem:[#allocation5 + $0x90] sm:$0xff]   ;;  %v957_v12 = vld [vmem:[#allocation5 + $0x58] sm:$0xff]   ;;  %v961_v16 = vld [vmem:[#allocation5 + $0x60] sm:$0xff]   ;;  %p1055_p2 = scmp.ne.s32.totalorder %s778_s6, %s1054_s7  ;;  %p1060_p4 = scmp.lt.s32.totalorder %s1054_s7, %s1054_s7 }
  0x2b   :  { %875 = vmatprep.subr.bf16.mxu1 %v950_v5  ;;  %v958_v13 = vld [vmem:[#allocation5 + $0xd8] sm:$0xff]   ;;  %v962_v17 = vld [vmem:[#allocation5 + $0xe0] sm:$0xff]   ;;  %v965_v20 = vld [vmem:[#allocation5 + $0x68] sm:$0xff]   ;;  %v1134_v35 = vsub.s32 %v172_v29, %v174_v30 }
  0x2c   :  { %v959_v14 = vld [vmem:[#allocation5 + $0x18] sm:$0xff]   ;;  %v963_v18 = vld [vmem:[#allocation5 + $0x20] sm:$0xff]   ;;  %v966_v21 = vld [vmem:[#allocation5 + $0xe8] sm:$0xff]   ;;  %p1061_p5 = por %p1060_p4, %p1059_p3 }
  0x2d   :  { %854 = vmatpush3.bf16.msra.mxu0 %v951_v6  ;;  %v960_v15 = vld [vmem:[#allocation5 + $0x98] sm:$0xff]   ;;  %v964_v19 = vld [vmem:[#allocation5 + $0xa0] sm:$0xff]   ;;  %v967_v25 = vld [vmem:[#allocation5 + $0x28] sm:$0xff]  }
  0x2e   :  { %876 = vmatpush3.bf16.msra.mxu1 %v952_v7  ;;  %855 = vmatprep.subr.bf16.mxu0 %v953_v8  ;;  %v968_v26 = vld [vmem:[#allocation5 + $0xa8] sm:$0xff]   ;;  %v969_v27 = vld [vmem:[#allocation5 + $0x70] sm:$0xff]   ;;  %v973_v33 = vld [vmem:[#allocation5 + $0x78] sm:$0xff]   ;;  %p1062_p6 = pnand %p1061_p5, %p1055_p2 }
  0x2f   :  { %877 = vmatprep.subr.bf16.mxu1 %v954_v9  ;;  %v970_v28 = vld [vmem:[#allocation5 + $0xf0] sm:$0xff]   ;;  %v974_v34 = vld [vmem:[#allocation5 + $0xf8] sm:$0xff]   ;;  %v978_v41 = vld [vmem:[#allocation5 + $0x140] sm:$0xff]  }
  0x30   :  { %v971_v31 = vld [vmem:[#allocation5 + $0x30] sm:$0xff]   ;;  %v975_v36 = vld [vmem:[#allocation5 + $0x38] sm:$0xff]   ;;  %v979_v42 = vld [vmem:[#allocation5 + $0x1c0] sm:$0xff]  }
  0x31   :  { %856 = vmatpush3.bf16.msra.mxu0 %v955_v10  ;;  %v972_v32 = vld [vmem:[#allocation5 + $0xb0] sm:$0xff]   ;;  %v976_v37 = vld [vmem:[#allocation5 + $0xb8] sm:$0xff]   ;;  %v980_v47 = vld [vmem:[#allocation5 + $0x100] sm:$0xff]  }
  0x32   :  { %878 = vmatpush3.bf16.msra.mxu1 %v956_v11  ;;  %857 = vmatprep.subr.bf16.mxu0 %v957_v12  ;;  %v39_v38 = vld [vmem:[#allocation2] sm:$0xff]  ;;  %v982_v50 = vld [vmem:[#allocation5 + $0x148] sm:$0xff]   ;;  %v981_v52 = vld [vmem:[#allocation5 + $0x180] sm:$0xff]  }
  0x33   :  { %879 = vmatprep.subr.bf16.mxu1 %v958_v13  ;;  %v169_v39 = vcombine.high %v39_v38, %v39_v38  ;;  %v176_v40 = vrot.slane %v39_v38, %v1134_v35  ;;  %v983_v54 = vld [vmem:[#allocation5 + $0x1c8] sm:$0xff]   ;;  %v986_v57 = vld [vmem:[#allocation5 + $0x150] sm:$0xff]   ;;  %v990_v61 = vld [vmem:[#allocation5 + $0x158] sm:$0xff]  }
  0x34   :  { %v984_v55 = vld [vmem:[#allocation5 + $0x108] sm:$0xff]   ;;  %v987_v59 = vld [vmem:[#allocation5 + $0x1d0] sm:$0xff]   ;;  %v991_v63 = vld [vmem:[#allocation5 + $0x1d8] sm:$0xff]  }
  0x35   :  { %858 = vmatpush3.bf16.msra.mxu0 %v959_v14  ;;  %v184_v43 = vcombine.high %v176_v40, %v176_v40  ;;  %v192_v44 = vrot.slane %v176_v40, %v1134_v35  ;;  %v1139_v45 = vrot.slane %v169_v39, %v1134_v35  ;;  %v985_v58 = vld [vmem:[#allocation5 + $0x188] sm:$0xff]   ;;  %v988_v60 = vld [vmem:[#allocation5 + $0x110] sm:$0xff]   ;;  %v992_v0 = vld [vmem:[#allocation5 + $0x118] sm:$0xff]  }
  0x36   :  { %880 = vmatpush3.bf16.msra.mxu1 %v960_v15  ;;  %859 = vmatprep.subr.bf16.mxu0 %v961_v16  ;;  %v989_v62 = vld [vmem:[#allocation5 + $0x190] sm:$0xff]   ;;  %v994_v1 = vld [vmem:[#allocation5 + $0x160] sm:$0xff]   ;;  %v993_v2 = vld [vmem:[#allocation5 + $0x198] sm:$0xff]  }
  0x37   :  { %881 = vmatprep.subr.bf16.mxu1 %v962_v17  ;;  %v206_v46 = vrot.slane %v184_v43, %v1134_v35  ;;  %v185_v48 = vcombine.high %v1139_v45, %v1139_v45  ;;  %v214_v49 = vcombine.high %v192_v44, %v192_v44  ;;  %v995_v3 = vld [vmem:[#allocation5 + $0x1e0] sm:$0xff]   ;;  %v998_v5 = vld [vmem:[#allocation5 + $0x168] sm:$0xff]   ;;  %v1002_v9 = vld [vmem:[#allocation5 + $0x170] sm:$0xff]   ;;  %v199_v17 = vrot.slane %v1139_v45, %v1134_v35 }
  0x38   :  { %v996_v4 = vld [vmem:[#allocation5 + $0x120] sm:$0xff]   ;;  %v999_v7 = vld [vmem:[#allocation5 + $0x1e8] sm:$0xff]   ;;  %v1003_v11 = vld [vmem:[#allocation5 + $0x1f0] sm:$0xff]  }
  0x39   :  { %860 = vmatpush3.bf16.msra.mxu0 %v963_v18  ;;  %642 = vmatprep.mubr.bf16.mxu0 %v206_v46  ;;  %v216_v51 = vcombine.high %v206_v46, %v206_v46  ;;  %v213_v53 = vrot.slane %v185_v48, %v1134_v35  ;;  %v997_v6 = vld [vmem:[#allocation5 + $0x1a0] sm:$0xff]   ;;  %v1000_v8 = vld [vmem:[#allocation5 + $0x128] sm:$0xff]   ;;  %v1004_v12 = vld [vmem:[#allocation5 + $0x130] sm:$0xff]  }
  0x3a   :  { %882 = vmatpush3.bf16.msra.mxu1 %v964_v19  ;;  %861 = vmatprep.subr.bf16.mxu0 %v965_v20  ;;  %v1001_v10 = vld [vmem:[#allocation5 + $0x1a8] sm:$0xff]   ;;  %v1006_v13 = vld [vmem:[#allocation5 + $0x178] sm:$0xff]   ;;  %v1005_v14 = vld [vmem:[#allocation5 + $0x1b0] sm:$0xff]   ;;  %v215_v19 = vcombine.high %v199_v17, %v199_v17 }
  0x3b   :  { %883 = vmatprep.subr.bf16.mxu1 %v966_v21  ;;  %682 = vmatprep.mubr.bf16.mxu1 %v216_v51  ;;  %v217_v56 = vcombine.high %v213_v53, %v213_v53  ;;  %v1007_v15 = vld [vmem:[#allocation5 + $0x1f8] sm:$0xff]  }
  0x3c   :  { %v1008_v16 = vld [vmem:[#allocation5 + $0x138] sm:$0xff]  }
  0x3d   :  { %862 = vmatpush3.bf16.msra.mxu0 %v967_v25  ;;  %v1009_v18 = vld [vmem:[#allocation5 + $0x1b8] sm:$0xff]  }
  0x3e   :  { %884 = vmatpush3.bf16.msra.mxu1 %v968_v26  ;;  %863 = vmatprep.subr.bf16.mxu0 %v969_v27 }
  0x3f   :  { %885 = vmatprep.subr.bf16.mxu1 %v970_v28 }
  0x41   :  { %864 = vmatpush3.bf16.msra.mxu0 %v971_v31 }
  0x42   :  { %886 = vmatpush3.bf16.msra.mxu1 %v972_v32  ;;  %865 = vmatprep.subr.bf16.mxu0 %v973_v33 }
  0x43   :  { %887 = vmatprep.subr.bf16.mxu1 %v974_v34 }
  0x45   :  { %866 = vmatpush3.bf16.msra.mxu0 %v975_v36 }
  0x46   :  { %888 = vmatpush3.bf16.msra.mxu1 %v976_v37  ;;  %895 = vmatprep.subr.bf16.mxu0 %v978_v41 }
  0x47   :  { %917 = vmatprep.subr.bf16.mxu1 %v979_v42 }
  0x48   :  { %643 = vmatmul.mubr.bf16.vlgmr.msra.gmra.mrb[0].mxu0 %v192_v44 }
  0x49   :  { %896 = vmatpush3.bf16.msra.mxu0 %v980_v47  ;;  %683 = vmatmul.mubr.bf16.vlgmr.msra.gmra.mrb[0].mxu1 %v214_v49 }
  0x4a   :  { %897 = vmatprep.subr.bf16.mxu0 %v982_v50  ;;  %918 = vmatpush3.bf16.msra.mxu1 %v981_v52 }
  0x4b   :  { %722 = vmatprep.mubr.bf16.mxu0 %v213_v53  ;;  %919 = vmatprep.subr.bf16.mxu1 %v983_v54 }
  0x4c   :  { %762 = vmatprep.mubr.bf16.mxu1 %v217_v56 }
  0x4d   :  { %898 = vmatpush3.bf16.msra.mxu0 %v984_v55 }
  0x4e   :  { %899 = vmatprep.subr.bf16.mxu0 %v986_v57  ;;  %920 = vmatpush3.bf16.msra.mxu1 %v985_v58 }
  0x4f   :  { %921 = vmatprep.subr.bf16.mxu1 %v987_v59 }
  0x51   :  { %900 = vmatpush3.bf16.msra.mxu0 %v988_v60 }
  0x52   :  { %901 = vmatprep.subr.bf16.mxu0 %v990_v61  ;;  %922 = vmatpush3.bf16.msra.mxu1 %v989_v62 }
  0x53   :  { %923 = vmatprep.subr.bf16.mxu1 %v991_v63 }
  0x55   :  { %902 = vmatpush3.bf16.msra.mxu0 %v992_v0 }
  0x56   :  { %903 = vmatprep.subr.bf16.mxu0 %v994_v1  ;;  %924 = vmatpush3.bf16.msra.mxu1 %v993_v2 }
  0x57   :  { %925 = vmatprep.subr.bf16.mxu1 %v995_v3 }
  0x59   :  { %904 = vmatpush3.bf16.msra.mxu0 %v996_v4 }
  0x5a   :  { %905 = vmatprep.subr.bf16.mxu0 %v998_v5  ;;  %926 = vmatpush3.bf16.msra.mxu1 %v997_v6 }
  0x5b   :  { %927 = vmatprep.subr.bf16.mxu1 %v999_v7 }
  0x5d   :  { %906 = vmatpush3.bf16.msra.mxu0 %v1000_v8 }
  0x5e   :  { %907 = vmatprep.subr.bf16.mxu0 %v1002_v9  ;;  %928 = vmatpush3.bf16.msra.mxu1 %v1001_v10 }
  0x5f   :  { %929 = vmatprep.subr.bf16.mxu1 %v1003_v11 }
  0x61   :  { %908 = vmatpush3.bf16.msra.mxu0 %v1004_v12 }
  0x62   :  { %909 = vmatprep.subr.bf16.mxu0 %v1006_v13  ;;  %930 = vmatpush3.bf16.msra.mxu1 %v1005_v14 }
  0x63   :  { %931 = vmatprep.subr.bf16.mxu1 %v1007_v15 }
  0x65   :  { %910 = vmatpush3.bf16.msra.mxu0 %v1008_v16 }
  0x66   :  { %932 = vmatpush3.bf16.msra.mxu1 %v1009_v18 }
  0x68   :  { %723 = vmatmul.mubr.bf16.vlgmr.msra.gmra.mrb[4].mxu0 %v199_v17 }
  0x69   :  { %763 = vmatmul.mubr.bf16.vlgmr.msra.gmra.mrb[4].mxu1 %v215_v19 }
 0x11b   :  { %v867_v20 = vpop.f32.mrb[0].mxu0 }
 0x11c   :  { %v868_v21 = vpop.f32.mrb[1].mxu0  ;;  %v889_v22 = vpop.f32.mrb[0].mxu1 }
 0x11d   :  { %v869_v23 = vadd.f32 %v868_v21, %v867_v20  ;;  %v870_v24 = vpop.f32.mrb[2].mxu0  ;;  %v890_v25 = vpop.f32.mrb[1].mxu1 }
 0x11e   :  { %v871_v26 = vpop.f32.mrb[3].mxu0  ;;  %v891_v27 = vadd.f32 %v890_v25, %v889_v22  ;;  %v892_v28 = vpop.f32.mrb[2].mxu1 }
 0x11f   :  { %v893_v29 = vpop.f32.mrb[3].mxu1 }
 0x120   :  { %v685_v30 = vadd.f32 %v891_v27, %v869_v23 }
 0x13b   :  { %v911_v31 = vpop.f32.mrb[4].mxu0 }
 0x13c   :  { %v912_v32 = vpop.f32.mrb[5].mxu0  ;;  %v933_v33 = vpop.f32.mrb[4].mxu1 }
 0x13d   :  { %v913_v34 = vadd.f32 %v912_v32, %v911_v31  ;;  %v914_v35 = vpop.f32.mrb[6].mxu0  ;;  %v934_v36 = vpop.f32.mrb[5].mxu1 }
 0x13e   :  { %v915_v37 = vpop.f32.mrb[7].mxu0  ;;  %v935_v39 = vadd.f32 %v934_v36, %v933_v33  ;;  %v936_v40 = vpop.f32.mrb[6].mxu1 }
 0x13f   :  { %v725_v38 = vadd.f32 %v913_v34, %v685_v30  ;;  %v937_v41 = vpop.f32.mrb[7].mxu1 }
 0x141   :  { %v765_v42 = vadd.f32 %v935_v39, %v725_v38 }
 0x143   :  { %770 = vst [vmem:[#allocation7] sm:$0x3] %v765_v42 }
 0x144   :  { %1065 = shalt.err (!%p1062_p6)
}
 0x145   :  { %s1066_s10 = scalar_lea.hbm %s1161_s2, 32 }
 0x146   :  { %p1067_p7 = scmp.ne.s32.totalorder %s1161_s2, %s1066_s10  ;;  %p1070_p8 = scmp.lt.u32.totalorder %s1066_s10, %s1161_s2 }
 0x148   :  { %p1072_p9 = pnand %p1070_p8, %p1067_p7 }
 0x14a   :  { %1075 = shalt.err (!%p1072_p9)
}
 0x14b   :  { %780 = dma.vmem_to_hbm [thread:$0]  %s778_s6, 32, %s1161_s2, [#allocation4]  }
 0x14c   :  { %1080 = dma.done.wait [#allocation4], 32  }
 0x14d   :  { %1081 = vsyncadd [#allocation4], 4294967264 }
 0x14e   :  { %784 = vsyncpa [#allocation3], 1 }
 0x14f   :  { %785 = vsyncpa [#allocation6], 1 }
 0x150   :  { %786 = vsyncpa [#allocation4], 1 }

</bundles_post_ra>
